<compile_context>
chip_gen: v7x
topology: tpu7x:2x2x1
jax: 0.10.0
libtpu: 0.0.40
codegen_flags: <defaults>
</compile_context>

<pallas_src>
from collections import namedtuple
import functools

import jax
import jax.numpy as jnp
import numpy as np
from jax.experimental import pallas as pl
from jax.experimental.pallas import tpu as pltpu


# ---------------------------------------------------------------------------
# Action library (parallel lists, exactly what ExpressionTree expects).
# Arity-0 "variable" actions store the X column index as their fn, mirroring
# the reference (`X[:, self.fn]`); index 0 is the learnable constant 'c'.
# ---------------------------------------------------------------------------
ACTION_NAMES   = ['c', 'x0', 'x1', 'x2', 'add', 'sub', 'mul', 'sin', 'cos']
ACTION_ARITIES = [ 0,    0,    0,    0,    2,     2,     2,     1,     1 ]
ACTION_FNS     = [None,  0,    1,    2,
                  jnp.add, jnp.subtract, jnp.multiply, jnp.sin, jnp.cos]


class ActionNode:
    """Python mirror of the PyTorch ActionNode (eval happens in the kernel)."""

    def __init__(self, index, action_fns, action_arities, action_names, c_index=None):
        self.name = action_names[index]
        self.fn = action_fns[index]
        self.arity = action_arities[index]
        self.left, self.right = None, None
        self.c_index = c_index

    def add_child(self, child=None):
        if not self.left:
            self.left = child
        elif not self.right:
            self.right = child
        else:
            raise RuntimeError('adding more than 2 children')


def build_tree(encoding):
    """Replicates ExpressionTree.__init__ (heap layout: parent of i is (i-1)//2)."""
    c_counter = 0
    nodes = {}
    for i, e in enumerate(encoding):
        if e < 0:
            continue
        if e == 0:
            nodes[i] = ActionNode(e, ACTION_FNS, ACTION_ARITIES, ACTION_NAMES,
                                  c_index=c_counter)
            c_counter += 1
        else:
            nodes[i] = ActionNode(e, ACTION_FNS, ACTION_ARITIES, ACTION_NAMES)
        if i > 0:
            par = (i - 1) // 2
            nodes[par].add_child(nodes[i])
    return nodes[0], c_counter


def collect_used_columns(root):
    """Feature (X column) indices the tree actually references."""
    cols = set()

    def walk(node):
        if node is None:
            return
        if node.arity == 0 and node.name != 'c':
            cols.add(node.fn)
        walk(node.left)
        walk(node.right)

    walk(root)
    return sorted(cols)


# ---------------------------------------------------------------------------
# Chip-aware tiling helpers.
# ---------------------------------------------------------------------------
def _ceil_div(a, b):
    return -(-a // b)


@functools.lru_cache(maxsize=None)
def _tpu_info():
    """(vmem_budget_bytes, tensorcores_per_chip) — best effort, safe defaults."""
    vmem_budget = 48 << 20                       # conservative fallback
    try:
        cap = int(pltpu.get_tpu_info().vmem_capacity_bytes)
        # leave headroom for Mosaic internal scratch; never exceed physical
        vmem_budget = max(16 << 20, min(cap - (16 << 20), 96 << 20))
    except Exception:
        pass
    cores = 1
    try:
        kind = jax.devices()[0].device_kind.lower()
        if 'v7' in kind:                         # v7x: 2 TensorCores per chip
            cores = 2
    except Exception:
        pass
    return vmem_budget, cores


def _choose_tiling(rows, *, per_row_bytes, num_cores, vmem_budget):
    """Pick (tm, padded_rows) for (tm, 128) lane-dense tiles.

    v5e/v6e (1 TC): fewest, largest tiles (no forced >=2 steps).
    v7x (2 TC):     step count a multiple of num_cores so the cores balance.
    tm is capped so the pipelined VMEM footprint stays inside the budget.
    """
    tm_cap = (int(vmem_budget * 0.6) // max(per_row_bytes, 1)) // 8 * 8
    tm_cap = max(8, min(2048, tm_cap))
    if rows <= 8:
        return rows, rows                        # single full block (block == array dim)

    if num_cores <= 1:
        tm = min(tm_cap, _ceil_div(rows, 8) * 8)
    else:
        steps = max(num_cores, _ceil_div(rows, tm_cap))
        steps = _ceil_div(steps, num_cores) * num_cores
        tm = min(tm_cap, _ceil_div(_ceil_div(rows, steps), 8) * 8)
    tm = max(8, tm)

    # Prefer an exact divisor of rows near tm (avoids padding) while keeping
    # the core-balance constraint; otherwise pad the last tile.
    for t in range(tm, max(7, tm - 256), -8):
        if rows % t == 0 and (num_cores <= 1 or (rows // t) % num_cores == 0):
            return t, rows
    return tm, _ceil_div(rows, tm) * tm


# ---------------------------------------------------------------------------
# Feature-major layout (prepared once, reusable across many trees).
# ---------------------------------------------------------------------------
Features = namedtuple("Features", "xt col_map tm rows_p n")


def prepare_features(X, used_cols=None, *, num_trees=1):
    """Build the feature-major, lane-dense (Fu, rows_p, 128) buffer for X.

    In symbolic-regression / GFlowNet loops the same X is evaluated against
    many trees: call this once and pass the result as `features=` to the
    forward functions to avoid re-doing the gather/pad/transpose HBM passes.
    """
    N, F = X.shape
    if used_cols is None:
        used_cols = list(range(F))
    used_cols = sorted(set(used_cols)) or [0]
    fu = len(used_cols)
    x_bytes = jnp.dtype(X.dtype).itemsize

    vmem_budget, num_cores = _tpu_info()
    rows = _ceil_div(N, 128)
    # 3 input buffers (Buffered(3)) + 2 output buffers (f32) per sublane row.
    per_row_bytes = 3 * fu * 128 * x_bytes + 2 * num_trees * 128 * 4
    tm, rows_p = _choose_tiling(rows, per_row_bytes=per_row_bytes,
                                num_cores=num_cores, vmem_budget=vmem_budget)
    Np = rows_p * 128

    # Gather only the used columns (skip when all are used); pad only if ragged.
    if fu < F:
        X = jnp.take(X, jnp.asarray(used_cols, dtype=jnp.int32), axis=1)
    if Np != N:
        X = jnp.pad(X, ((0, Np - N), (0, 0)))
    if fu == 1:
        xt = X.reshape(1, rows_p, 128)           # no transpose needed
    else:
        xt = jnp.transpose(X).reshape(fu, rows_p, 128)

    col_map = {c: i for i, c in enumerate(used_cols)}
    return Features(xt, col_map, tm, rows_p, N)


# ---------------------------------------------------------------------------
# Pallas kernel: K static trees are unrolled into the kernel body at trace
# time; all elementwise evaluation (VPU add/mul, sin/cos, SMEM-scalar
# broadcast) runs on full-vreg (TM, 128) VMEM tiles, re-used K times.
# ---------------------------------------------------------------------------
def make_expr_kernel(roots, col_map, const_offsets):
    def kernel(const_ref, x_ref, o_ref):
        # const_ref: SMEM f32[total_constants]
        # x_ref:     VMEM [Fu, TM, 128]   (feature-major batch tile)
        # o_ref:     VMEM f32[K, TM, 128] (one output tile per tree)
        #
        # No leaf cache: re-reading x_ref[row] costs only vld slots (3/cycle)
        # and keeps live-value vreg pressure tiny — avoids spills on deep
        # trees at large TM.  SMEM constants stay cached (scalar sregs).
        const_cache = {}

        def const(idx):
            if idx not in const_cache:
                const_cache[idx] = const_ref[idx]
            return const_cache[idx]

        def ev(node, coff):
            if node.arity == 2:
                return node.fn(ev(node.left, coff), ev(node.right, coff))
            if node.arity == 1:
                return node.fn(ev(node.left, coff))
            if node.name == 'c':
                return const(coff + node.c_index)          # scalar; broadcasts in ops
            return x_ref[col_map[node.fn]].astype(jnp.float32)   # (TM, 128)

        for t, root in enumerate(roots):
            res = ev(root, const_offsets[t])
            # Constant-only trees yield a scalar; broadcast to the output tile.
            o_ref[t] = jnp.broadcast_to(res, o_ref.shape[1:]).astype(o_ref.dtype)

    return kernel


def expression_trees_forward(trees, X, *, features=None):
    """Evaluate K expression trees over the same X in ONE pallas_call.

    trees: list of (root, constants) pairs.  Returns f32 [K, N].
    Each HBM byte of X is read once and reused by all K trees.
    """
    K = len(trees)
    N, F = X.shape

    used = set()
    for root, _ in trees:
        used.update(collect_used_columns(root))

    if features is None:
        features = prepare_features(X, sorted(used), num_trees=K)
    xt, col_map, tm, rows_p, n = features
    if n != N:
        raise ValueError("prepared features were built for a different batch size")
    missing = used.difference(col_map)
    if missing:
        raise ValueError(f"prepared features are missing columns {sorted(missing)}")

    # Concatenate per-tree constants into one SMEM vector (offsets baked in).
    const_parts, const_offsets, off = [], [], 0
    for _, c in trees:
        c = jnp.asarray(c, dtype=jnp.float32).reshape(-1)
        const_offsets.append(off)
        off += int(c.shape[0])
        const_parts.append(c)
    const_arr = (jnp.concatenate(const_parts) if off > 0
                 else jnp.zeros((1,), jnp.float32))          # keep SMEM operand non-empty

    fu = xt.shape[0]
    steps = rows_p // tm
    x_spec_kwargs = {}
    if steps >= 3:
        x_spec_kwargs["pipeline_mode"] = pl.Buffered(3)      # hide DMA issue latency

    vmem_budget, _ = _tpu_info()
    needed = (3 * fu * tm * 128 * jnp.dtype(xt.dtype).itemsize
              + 2 * K * tm * 128 * 4 + (2 << 20))
    vmem_limit = int(min(max(needed, 16 << 20), vmem_budget))

    roots = [r for r, _ in trees]
    out = pl.pallas_call(
        make_expr_kernel(roots, col_map, const_offsets),
        out_shape=jax.ShapeDtypeStruct((K, rows_p, 128), jnp.float32),
        grid=(steps,),
        in_specs=[
            pl.BlockSpec(memory_space=pltpu.MemorySpace.SMEM),        # constants (scalars)
            pl.BlockSpec((fu, tm, 128), lambda i: (0, i, 0), **x_spec_kwargs),  # X tile
        ],
        out_specs=pl.BlockSpec((K, tm, 128), lambda i: (0, i, 0)),
        compiler_params=pltpu.CompilerParams(
            dimension_semantics=("parallel",),
            vmem_limit_bytes=vmem_limit),
    )(const_arr, xt)

    out = out.reshape(K, rows_p * 128)
    if rows_p * 128 != N:                                     # slice only if padded
        out = out[:, :N]
    return out


def expression_tree_forward(root, constants, X, *, features=None):
    """Equivalent of ExpressionTree.forward(X): X is [N, F] -> returns f32 [N]."""
    return expression_trees_forward([(root, constants)], X, features=features)[0]


# Pure-JAX reference (mirrors ActionNode.eval) for correctness checking.
def ref_eval(node, X, constants):
    if node.arity == 2:
        return node.fn(ref_eval(node.left, X, constants),
                       ref_eval(node.right, X, constants))
    if node.arity == 1:
        return node.fn(ref_eval(node.left, X, constants))
    if node.name == 'c':
        return constants[node.c_index]
    return X[:, node.fn]


if __name__ == "__main__":
    key = jax.random.PRNGKey(0)
    kc, kc2, kx, kx2 = jax.random.split(key, 4)

    # Tree 1: add( mul(x0, c), sin(x2) )
    #   node 0: add, node 1: mul, node 2: sin,
    #   node 3: x0,  node 4: c,   node 5: x2,  node 6: empty
    encoding1 = [4, 6, 7, 1, 0, 3, -1]
    root1, c1 = build_tree(encoding1)
    constants1 = jax.random.uniform(kc, (max(c1, 1),), dtype=jnp.float32)

    # Tree 2: sub( c, cos(x1) )
    encoding2 = [5, 0, 8, -1, -1, 2, -1]
    root2, c2 = build_tree(encoding2)
    constants2 = jax.random.uniform(kc2, (max(c2, 1),), dtype=jnp.float32)

    N, F = 512, 4
    X = jax.random.normal(kx, (N, F), dtype=jnp.float32)

    # --- Test 1: single tree, N a multiple of 128 (no padding path) ----------
    out1 = jax.block_until_ready(expression_tree_forward(root1, constants1, X))
    ref1 = jnp.broadcast_to(ref_eval(root1, X, constants1), (N,))
    assert out1.shape == (N,) and out1.dtype == jnp.float32
    np.testing.assert_allclose(np.asarray(out1), np.asarray(ref1),
                               rtol=1e-5, atol=1e-5)

    # --- Test 2: two trees in ONE pallas_call (X read once, reused 2x) -------
    out_multi = jax.block_until_ready(
        expression_trees_forward([(root1, constants1), (root2, constants2)], X))
    ref2 = jnp.broadcast_to(ref_eval(root2, X, constants2), (N,))
    assert out_multi.shape == (2, N)
    np.testing.assert_allclose(np.asarray(out_multi[0]), np.asarray(ref1),
                               rtol=1e-5, atol=1e-5)
    np.testing.assert_allclose(np.asarray(out_multi[1]), np.asarray(ref2),
                               rtol=1e-5, atol=1e-5)

    # --- Test 3: ragged N (exercises the pad/slice path) ---------------------
    N2 = 300
    X2 = jax.random.normal(kx2, (N2, F), dtype=jnp.float32)
    out3 = jax.block_until_ready(expression_tree_forward(root2, constants2, X2))
    ref3 = jnp.broadcast_to(ref_eval(root2, X2, constants2), (N2,))
    assert out3.shape == (N2,) and out3.dtype == jnp.float32
    np.testing.assert_allclose(np.asarray(out3), np.asarray(ref3),
                               rtol=1e-5, atol=1e-5)

    print("KERNEL_OK")
</pallas_src>

<mosaic_0001>
module attributes {stable_mosaic.version = 11 : i64} {
  func.func @kernel(%arg0: i32, %arg1: memref<1xf32, #tpu.memory_space<smem>>, %arg2: memref<2x4x128xf32, #tpu.memory_space<vmem>>, %arg3: memref<1x4x128xf32, #tpu.memory_space<vmem>>) attributes {dimension_semantics = [#tpu.dimension_semantics<parallel>], iteration_bounds = array<i64: 1>, scalar_prefetch = 0 : i64, scratch_operands = 0 : i64, tpu.core_type = #tpu.core_type<tc>, window_params = [{transform_indices = @transform_0, window_bounds = array<i64: 1>}, {transform_indices = @transform_1, window_bounds = array<i64: 2, 4, 128>}, {transform_indices = @transform_2, window_bounds = array<i64: 1, 4, 128>}]} {
    %c0 = arith.constant 0 : index
    %c0_0 = arith.constant 0 : index
    %c0_1 = arith.constant 0 : index
    %0 = vector.load %arg2[%c0, %c0_0, %c0_1] : memref<2x4x128xf32, #tpu.memory_space<vmem>>, vector<1x4x128xf32>
    %1 = vector.shape_cast %0 : vector<1x4x128xf32> to vector<4x128xf32>
    %c0_2 = arith.constant 0 : index
    %2 = memref.load %arg1[%c0_2] : memref<1xf32, #tpu.memory_space<smem>>
    %3 = vector.broadcast %2 : f32 to vector<4x128xf32>
    %4 = arith.mulf %1, %3 : vector<4x128xf32>
    %c1 = arith.constant 1 : index
    %c0_3 = arith.constant 0 : index
    %c0_4 = arith.constant 0 : index
    %5 = vector.load %arg2[%c1, %c0_3, %c0_4] : memref<2x4x128xf32, #tpu.memory_space<vmem>>, vector<1x4x128xf32>
    %6 = vector.shape_cast %5 : vector<1x4x128xf32> to vector<4x128xf32>
    %7 = math.sin %6 : vector<4x128xf32>
    %8 = arith.addf %4, %7 : vector<4x128xf32>
    %c0_5 = arith.constant 0 : index
    %c0_6 = arith.constant 0 : index
    %c0_7 = arith.constant 0 : index
    %9 = vector.load %arg3[%c0_5, %c0_6, %c0_7] : memref<1x4x128xf32, #tpu.memory_space<vmem>>, vector<1x4x128xf32>
    %10 = vector.shape_cast %9 : vector<1x4x128xf32> to vector<4x128xf32>
    %11 = vector.shape_cast %8 : vector<4x128xf32> to vector<1x4x128xf32>
    tpu.vector_store %arg3[%c0_5, %c0_6, %c0_7], %11 {strides = array<i32>} : memref<1x4x128xf32, #tpu.memory_space<vmem>>, vector<1x4x128xf32>,
    return
  }
  func.func @transform_0(%arg0: i32) -> i32 {
    %c0_i32 = arith.constant 0 : i32
    %c0_i32_0 = arith.constant 0 : i32
    return %c0_i32 : i32
  }
  func.func @transform_1(%arg0: i32) -> (i32, i32, i32) {
    %c0_i32 = arith.constant 0 : i32
    %c0_i32_0 = arith.constant 0 : i32
    %c0_i32_1 = arith.constant 0 : i32
    return %c0_i32, %arg0, %c0_i32_0 : i32, i32, i32
  }
  func.func @transform_2(%arg0: i32) -> (i32, i32, i32) {
    %c0_i32 = arith.constant 0 : i32
    %c0_i32_0 = arith.constant 0 : i32
    %c0_i32_1 = arith.constant 0 : i32
    return %c0_i32, %arg0, %c0_i32_0 : i32, i32, i32
  }
}

</mosaic_0001>

<bundles_post_ra>
// kernel: tpu_custom_call.1
= control target key start
LH: loop header
LB: loop body
LE: loop exit
PB: predicated region body
PF: predicated region fallthrough
CT: control target
= control target key end

     0   :  { %8 = vsyncpa [#allocation4], 0  ;;  %s297_s0 = inlined_call_operand.<no memory space> [shape: f32[1], index: 0, kind: input, shape index: {}]   ;;  %s298_s1 = inlined_call_operand.hbm [shape: f32[2,4,128], index: 1, kind: input, shape index: {}]   ;;  %s299_s2 = inlined_call_operand.hbm [shape: f32[1,4,128], index: 2, kind: output, shape index: {}]  }
   0x1   :  { %9 = vsyncpa [#allocation5], 0  ;;  %s224_s9 = smov [#allocation3]   ;;  %s176_s13 = scalar_lea.hbm %s298_s1, 128 }
   0x2   :  { %s17_s10 = sshll.u32 %s224_s9, 4  ;;  %p177_p0 = scmp.ne.s32.totalorder %s298_s1, %s176_s13  ;;  %s18_s10 = int_to_ptr.vmem [resolvable:$true] %s17_s10 }
   0x3   :  { %p180_p1 = scmp.lt.u32.totalorder %s176_s13, %s298_s1 }
   0x5   :  { %p182_p2 = pnand %p180_p1, %p177_p0 }
   0x7   :  { %185 = shalt.err (!%p182_p2)
}
   0x8   :  { %s186_s18 = scalar_lea.vmem %s18_s10, 128  ;;  %p191_p4 = scmp.lt.s32.totalorder %s18_s10, %s18_s10 }
   0x9   :  { %p187_p3 = scmp.ne.s32.totalorder %s18_s10, %s186_s18  ;;  %p192_p5 = scmp.lt.s32.totalorder %s186_s18, %s186_s18 }
   0xb   :  { %p193_p6 = por %p192_p5, %p191_p4 }
   0xd   :  { %p194_p7 = pnand %p193_p6, %p187_p3 }
   0xf   :  { %197 = shalt.err (!%p194_p7)
}
  0x10   :  { %s225_s19 = smov 64   ;;  %s226_s20 = smov 4  }
  0x11   :  { %23 = dma.hbm_to_vmem [thread:$0]  %s298_s1, 128, %s18_s10, [#allocation4], %s225_s19, %s225_s19, %s226_s20  }
  0x12   :  { %220 = dma.done.wait [#allocation4], 128  }
  0x13   :  { %221 = vsyncadd [#allocation4], 4294967168  ;;  %v261_v0 = vld [vmem:[#allocation3 + $0x4] sm:$0xf]  ;;  %v227_v12 = vmov 683565275  }
  0x14   :  { %v36_v1 = vand.u32 2139095040, %v261_v0  ;;  %v33_v3 = vand.u32 2147483647, %v261_v0  ;;  %v228_v14 = vmov 2475754826   ;;  %vm35_vm7 = vcmp.lt.s32.totalorder %v261_v0, 0 }
  0x15   :  { %v229_v16 = vmov 2131351028   ;;  %v230_v18 = vmov 2102212464   ;;  %v231_v20 = vmov 920167782   ;;  %vm125_vm12 = vweird.f32 %v261_v0 }
  0x16   :  { %v37_v2 = vshrl.u32 %v36_v1, 23  ;;  %v40_v6 = vand.u32 8388607, %v33_v3  ;;  %v232_v27 = vmov 1326507024   ;;  %s233_s24 = smov [#allocation6]  }
  0x17   :  { %vm34_vm8 = vcmp.le.f32.partialorder %v33_v3, 0.7853982  ;;  %s145_s25 = sshll.u32 %s233_s24, 4  ;;  %s146_s25 = int_to_ptr.vmem [resolvable:$true] %s145_s25 }
  0x18   :  { %v154_v4 = vadd.s32 4294967169, %v37_v2  ;;  %v41_v9 = vor.u32 8388608, %v40_v6  ;;  %s198_s26 = scalar_lea.vmem %s146_s25, 64  ;;  %p203_p9 = scmp.lt.s32.totalorder %s146_s25, %s146_s25 }
  0x19   :  { %p199_p8 = scmp.ne.s32.totalorder %s146_s25, %s198_s26  ;;  %p204_p10 = scmp.lt.s32.totalorder %s198_s26, %s198_s26 }
  0x1a   :  { %v43_v5 = vadd.s32 1, %v154_v4  ;;  %v81_v29 = vshll.u32 %v41_v9, 8 }
  0x1b   :  { %p205_p11 = por %p204_p10, %p203_p9 }
  0x1c   :  { %vm44_vm0 = vcmp.gt.s32.totalorder %v43_v5, 0 }
  0x1d   :  { %v45_v7 = vsel %vm44_vm0, %v43_v5, 0  ;;  %p206_p12 = pnand %p205_p11, %p199_p8 }
  0x1e   :  { %v47_v8 = vand.u32 31, %v45_v7  ;;  %v46_v10 = vshrl.u32 %v45_v7, 5 }
  0x20   :  { %v48_v11 = vsub.s32 32, %v47_v8  ;;  %v50_v13 = vshll.u32 %v227_v12, %v47_v8  ;;  %v53_v15 = vshll.u32 %v228_v14, %v47_v8  ;;  %v56_v17 = vshll.u32 %v229_v16, %v47_v8 }
  0x21   :  { %v59_v19 = vshll.u32 %v230_v18, %v47_v8  ;;  %v62_v21 = vshll.u32 %v231_v20, %v47_v8  ;;  %vm65_vm1 = vcmp.lt.s32.totalorder %v46_v10, 1  ;;  %vm68_vm2 = vcmp.lt.s32.totalorder %v46_v10, 4 }
  0x22   :  { %v49_v22 = vshrl.u32 %v227_v12, %v48_v11  ;;  %v51_v23 = vshrl.u32 %v228_v14, %v48_v11  ;;  %v54_v24 = vshrl.u32 %v229_v16, %v48_v11  ;;  %v57_v25 = vshrl.u32 %v230_v18, %v48_v11 }
  0x23   :  { %v60_v26 = vshrl.u32 %v231_v20, %v48_v11  ;;  %v63_v28 = vshrl.u32 %v232_v27, %v48_v11  ;;  %vm66_vm3 = vcmp.lt.s32.totalorder %v46_v10, 2  ;;  %vm67_vm4 = vcmp.lt.s32.totalorder %v46_v10, 3 }
  0x24   :  { %v52_v30 = vor.u32 %v51_v23, %v50_v13  ;;  %v55_v31 = vor.u32 %v54_v24, %v53_v15  ;;  %v58_v32 = vor.u32 %v57_v25, %v56_v17  ;;  %v27_v23 = vld [vmem:[#allocation3] sm:$0xf]  ;;  %v29_v24 = vstv %s297_s0 }
  0x25   :  { %v61_v33 = vor.u32 %v60_v26, %v59_v19  ;;  %v64_v34 = vor.u32 %v63_v28, %v62_v21  ;;  %v30_v27 = vmul.f32 %v29_v24, %v27_v23 }
  0x26   :  { %v69_v35 = vsel %vm65_vm1, %v49_v22, %v52_v30  ;;  %v70_v36 = vsel %vm68_vm2, %v58_v32, 2102212464  ;;  %v73_v37 = vsel %vm65_vm1, %v52_v30, %v55_v31  ;;  %v77_v38 = vsel %vm65_vm1, %v55_v31, %v58_v32 }
  0x27   :  { %v71_v39 = vsel %vm67_vm4, %v55_v31, %v70_v36  ;;  %v74_v40 = vsel %vm68_vm2, %v61_v33, 920167782  ;;  %v78_v41 = vsel %vm68_vm2, %v64_v34, 1326507024 }
  0x28   :  { %v75_v42 = vsel %vm67_vm4, %v58_v32, %v74_v40  ;;  %v79_v43 = vsel %vm67_vm4, %v61_v33, %v78_v41  ;;  %v72_v44 = vsel %vm66_vm3, %v69_v35, %v71_v39 }
  0x29   :  { %v76_v45 = vsel %vm66_vm3, %v73_v37, %v75_v42  ;;  %v80_v46 = vsel %vm66_vm3, %v77_v38, %v79_v43  ;;  %v88_v51 = vmul.u32 %v81_v29, %v72_v44 }
  0x2a   :  { %v267_v47 = vmul.u32.u64.low %v81_v29, %v80_v46  ;;  %v268_v48 = vmul.u32.u64.high %v81_v29, %v80_v46, %v267_v47  ;;  %v270_v49 = vmul.u32.u64.low %v81_v29, %v76_v45  ;;  %v271_v50 = vmul.u32.u64.high %v81_v29, %v76_v45, %v270_v49 }
  0x2c   :  { %vm90_vm5 = vc.u32 %v268_v48, %v270_v49  ;;  %v91_v52 = vadd.s32 1, %v271_v50  ;;  %v89_v63 = vadd.s32 %v270_v49, %v268_v48 }
  0x2e   :  { %v92_v53 = vsel %vm90_vm5, %v91_v52, %v271_v50 }
  0x2f   :  { %v93_v54 = vadd.s32 %v92_v53, %v88_v51 }
  0x31   :  { %v94_v55 = vadd.s32 536870912, %v93_v54 }
  0x33   :  { %v95_v56 = vshrl.u32 %v94_v55, 30 }
  0x35   :  { %v96_v57 = vshll.u32 %v95_v56, 30  ;;  %v119_v13 = vsub.s32 4, %v95_v56 }
  0x37   :  { %v97_v58 = vsub.s32 %v93_v54, %v96_v57  ;;  %v120_v16 = vsel %vm35_vm7, %v119_v13, %v95_v56 }
  0x38   :  { %v122_v19 = vsel %vm34_vm8, 0, %v120_v16 }
  0x39   :  { %v99_v59 = vsub.s32 0, %v97_v58  ;;  %v126_v20 = vadd.s32 3, %v122_v19 }
  0x3b   :  { %v155_v60 = vmin.u32 %v99_v59, %v97_v58  ;;  %v127_v21 = vand.u32 3, %v126_v20 }
  0x3d   :  { %v101_v61 = vclz %v155_v60  ;;  %vm132_vm9 = vcmp.eq.s32.totalorder %v127_v21, 2  ;;  %vm129_vm10 = vcmp.eq.s32.totalorder %v127_v21, 0  ;;  %vm128_vm11 = vcmp.lt.s32.totalorder %v127_v21, 2 }
  0x3f   :  { %v156_v62 = vadd.s32 4294967294, %v101_v61 }
  0x41   :  { %vm157_vm6 = vcmp.lt.s32.totalorder %v156_v62, 0 }
  0x42   :  { %v104_v1 = vsel %vm157_vm6, 0, %v156_v62 }
  0x43   :  { %v105_v2 = vsub.s32 32, %v104_v1  ;;  %v106_v4 = vshll.u32 %v97_v58, %v104_v1  ;;  %v109_v5 = vsub.s32 4294967266, %v104_v1 }
  0x45   :  { %v107_v6 = vshrl.u32 %v89_v63, %v105_v2  ;;  %v110_v7 = vadd.s32 127, %v109_v5 }
  0x47   :  { %v108_v8 = vor.u32 %v107_v6, %v106_v4  ;;  %v111_v9 = vshll.u32 %v110_v7, 23 }
  0x49   :  { %v112_v10 = vor.u32 4788187, %v111_v9  ;;  %v115_v11 = vcvt.s32.f32 %v108_v8 }
  0x4b   :  { %v113_v12 = vand.u32 2147483647, %v112_v10 }
  0x4d   :  { %v116_v14 = vmul.f32 %v115_v11, %v113_v12 }
  0x4f   :  { %v117_v15 = vxor.u32 2147483648, %v116_v14 }
  0x51   :  { %v118_v17 = vsel %vm35_vm7, %v117_v15, %v116_v14 }
  0x52   :  { %v121_v18 = vsel %vm34_vm8, %v261_v0, %v118_v17 }
  0x53   :  { %172 = vcosq.f32 %v121_v18 }
  0x54   :  { %174 = vsinq.f32 %v121_v18 }
  0x5d   :  { %v173_v22 = vpop.eup %172 }
  0x5e   :  { %v175_v25 = vpop.eup %174  ;;  %v133_v3 = vxor.u32 2147483648, %v173_v22 }
  0x5f   :  { %v130_v26 = vxor.u32 2147483648, %v175_v25 }
  0x60   :  { %v134_v28 = vsel %vm132_vm9, %v133_v3, %v175_v25 }
  0x61   :  { %v131_v29 = vsel %vm129_vm10, %v173_v22, %v130_v26 }
  0x62   :  { %v135_v30 = vsel %vm128_vm11, %v131_v29, %v134_v28 }
  0x63   :  { %v136_v31 = vsel %vm125_vm12, nan, %v135_v30 }
  0x64   :  { %v137_v32 = vadd.f32 %v136_v31, %v30_v27 }
  0x66   :  { %138 = vst [vmem:[#allocation6] sm:$0xf] %v137_v32 }
  0x67   :  { %209 = shalt.err (!%p206_p12)
}
  0x68   :  { %s210_s28 = scalar_lea.hbm %s299_s2, 64 }
  0x69   :  { %p211_p13 = scmp.ne.s32.totalorder %s299_s2, %s210_s28  ;;  %p214_p0 = scmp.lt.u32.totalorder %s210_s28, %s299_s2 }
  0x6b   :  { %p216_p1 = pnand %p214_p0, %p211_p13 }
  0x6d   :  { %219 = shalt.err (!%p216_p1)
}
  0x6e   :  { %148 = dma.vmem_to_hbm [thread:$0]  %s146_s25, 64, %s299_s2, [#allocation5]  }
  0x6f   :  { %222 = dma.done.wait [#allocation5], 64  }
  0x70   :  { %223 = vsyncadd [#allocation5], 4294967232 }
  0x71   :  { %152 = vsyncpa [#allocation4], 1 }
  0x72   :  { %153 = vsyncpa [#allocation5], 1 }

</bundles_post_ra>
